<compile_context>
chip_gen: v7x
topology: tpu7x:2x2x1
jax: 0.10.0
libtpu: 0.0.40
codegen_flags: <defaults>
</compile_context>

<pallas_src>
import functools

import jax
import jax.numpy as jnp
from jax.experimental import pallas as pl
from jax.experimental.pallas import tpu as pltpu

LANES = 128
SUBLANES = 8
TARGET_BLOCK_BYTES = 4 << 20      # per-input, per-buffer streaming block (~4 MiB)
VMEM_LIMIT_BYTES = 32 << 20       # 2 inputs x 2 buffers x 4 MiB + scratch, all gens


def _round_up(x, m):
    return ((x + m - 1) // m) * m


def _cdiv(a, b):
    return (a + b - 1) // b


def _num_tensorcores():
    # 2 TensorCores per chip on v7x; v5e/v6e are single-core. Best-effort
    # detection (perf only, never correctness).
    try:
        kind = jax.devices()[0].device_kind.lower()
    except Exception:
        return 1
    return 2 if "v7" in kind else 1


def _mse_kernel(s_ref, t_ref, out_ref, acc_ref, *, inv_count, valid_rows,
                tile_rows, steps, needs_mask):
    c = pl.program_id(0)   # core-split axis ("parallel")
    i = pl.program_id(1)   # reduction axis ("arbitrary")

    @pl.when(i == 0)
    def _():
        acc_ref[...] = jnp.zeros_like(acc_ref)

    # Cast-on-load; inner math in f32 (native-dtype DMA keeps bf16 at half bytes).
    d = s_ref[...].astype(jnp.float32) - t_ref[...].astype(jnp.float32)
    sq = d * d

    def _accumulate(vals):
        # Lane-dense accumulation: (tile_rows, 128) -> (8, 128), pure vreg adds.
        acc_ref[...] += jnp.sum(
            vals.reshape(tile_rows // SUBLANES, SUBLANES, LANES), axis=0)

    if not needs_mask:
        _accumulate(sq)
    else:
        blk = c * steps + i
        block_is_full = (blk + 1) * tile_rows <= valid_rows

        # Fast path: fully-valid interior blocks — no iota/compare/select work.
        @pl.when(block_is_full)
        def _():
            _accumulate(sq)

        # Slow path: the single ragged tail block and any clamped duplicate
        # blocks from the core split. Rows >= valid_rows may hold stale VMEM
        # data; jnp.where discards them before they reach the accumulator.
        @pl.when(jnp.logical_not(block_is_full))
        def _():
            row_ids = blk * tile_rows + jax.lax.broadcasted_iota(
                jnp.int32, (tile_rows, LANES), 0)
            _accumulate(jnp.where(row_ids < valid_rows, sq, 0.0))

    @pl.when(i == steps - 1)
    def _():
        out_ref[0] = acc_ref[...] * inv_count


def hint_loss(fm_s, fm_t):
    """MSE loss between student and teacher feature maps (any shape/dtype)."""
    assert fm_s.shape == fm_t.shape, "fm_s and fm_t must have identical shapes"
    n_elem = fm_s.size

    # Flatten (layout-preserving reshape, no HBM copy); keep native dtypes.
    s_flat = fm_s.reshape(-1)
    t_flat = fm_t.reshape(-1)

    rows = n_elem // LANES            # full 128-wide lane rows
    rem = n_elem - rows * LANES       # <128-element tail

    # Tail handled with a tiny plain-JAX op (no whole-array pad / rewrite).
    tail_sq = None
    if rem:
        ts = s_flat[rows * LANES:].astype(jnp.float32)
        tt = t_flat[rows * LANES:].astype(jnp.float32)
        tail_sq = jnp.sum((ts - tt) ** 2)

    if rows == 0:
        return tail_sq / n_elem

    if rem:
        # Rare unaligned case: the aligned prefix is materialized once for the
        # kernel; the common lane-aligned path below is copy-free.
        s2d = s_flat[: rows * LANES].reshape(rows, LANES)
        t2d = t_flat[: rows * LANES].reshape(rows, LANES)
    else:
        s2d = s_flat.reshape(rows, LANES)
        t2d = t_flat.reshape(rows, LANES)

    # Streaming block size: ~4 MiB per input per buffer (8192 rows f32 /
    # 16384 rows bf16), a multiple of 8 sublanes, clipped for small inputs.
    itemsize = max(fm_s.dtype.itemsize, fm_t.dtype.itemsize)
    tile = TARGET_BLOCK_BYTES // (LANES * itemsize)
    tile = max(SUBLANES, min(tile, _round_up(rows, SUBLANES)))
    tile = _round_up(tile, SUBLANES)

    n_blocks = _cdiv(rows, tile)
    num_cores = _num_tensorcores() if n_blocks >= 2 else 1
    steps = _cdiv(n_blocks, num_cores)
    needs_mask = (num_cores * steps * tile) != rows

    def in_map(c, i):
        # Clamp so extra blocks from the core split stay in range; their
        # contribution is masked to zero inside the kernel.
        return (jnp.minimum(c * steps + i, n_blocks - 1), 0)

    kernel = functools.partial(
        _mse_kernel,
        inv_count=1.0 / float(n_elem),
        valid_rows=rows,
        tile_rows=tile,
        steps=steps,
        needs_mask=needs_mask,
    )

    bytes_in = rows * LANES * (fm_s.dtype.itemsize + fm_t.dtype.itemsize)
    bytes_out = num_cores * SUBLANES * LANES * 4

    partials = pl.pallas_call(
        kernel,
        out_shape=jax.ShapeDtypeStruct((num_cores, SUBLANES, LANES), jnp.float32),
        grid_spec=pltpu.PrefetchScalarGridSpec(
            num_scalar_prefetch=0,
            grid=(num_cores, steps),
            in_specs=[
                pl.BlockSpec((tile, LANES), in_map),
                pl.BlockSpec((tile, LANES), in_map),
            ],
            out_specs=pl.BlockSpec((1, SUBLANES, LANES), lambda c, i: (c, 0, 0)),
            scratch_shapes=[pltpu.VMEM((SUBLANES, LANES), jnp.float32)],
        ),
        # NOTE(v7x): if tracing shows the leading "parallel" axis running
        # serially on the two TensorCores, switch it to pltpu.CORE_PARALLEL.
        compiler_params=pltpu.CompilerParams(
            dimension_semantics=("parallel", "arbitrary"),
            vmem_limit_bytes=VMEM_LIMIT_BYTES),
        cost_estimate=pl.CostEstimate(
            flops=3 * n_elem, transcendentals=0,
            bytes_accessed=bytes_in + bytes_out),
    )(s2d, t2d)

    # Tiny final reduce of the per-core lane-dense partials (already 1/N-scaled).
    loss = jnp.sum(partials)
    if rem:
        loss = loss + tail_sq * jnp.float32(1.0 / n_elem)
    return loss


if __name__ == "__main__":
    key = jax.random.PRNGKey(0)
    k_s, k_t = jax.random.split(key)

    # Small NCHW feature maps: batch=2, channels=4, spatial=16x16
    fm_s = jax.random.normal(k_s, (2, 4, 16, 16), dtype=jnp.float32)
    fm_t = jax.random.normal(k_t, (2, 4, 16, 16), dtype=jnp.float32)

    loss = hint_loss(fm_s, fm_t)
    jax.block_until_ready(loss)

    # sanity check against plain-JAX reference (same semantics as F.mse_loss)
    ref = jnp.mean((fm_s - fm_t) ** 2)
    assert jnp.allclose(loss, ref, rtol=1e-5, atol=1e-6), (loss, ref)

    print("KERNEL_OK")
</pallas_src>

<mosaic_0001>
module attributes {stable_mosaic.version = 11 : i64} {
  func.func @_mse_kernel(%arg0: i32, %arg1: i32, %arg2: memref<16x128xf32, #tpu.memory_space<vmem>>, %arg3: memref<16x128xf32, #tpu.memory_space<vmem>>, %arg4: memref<1x8x128xf32, #tpu.memory_space<vmem>>, %arg5: memref<8x128xf32, #tpu.memory_space<vmem>>) attributes {dimension_semantics = [#tpu.dimension_semantics<parallel>, #tpu.dimension_semantics<arbitrary>], iteration_bounds = array<i64: 1, 1>, scalar_prefetch = 0 : i64, scratch_operands = 1 : i64, tpu.core_type = #tpu.core_type<tc>, window_params = [{transform_indices = @transform_0, window_bounds = array<i64: 16, 128>}, {transform_indices = @transform_1, window_bounds = array<i64: 16, 128>}, {transform_indices = @transform_2, window_bounds = array<i64: 1, 8, 128>}]} {
    %c0_i32 = arith.constant 0 : i32
    %0 = arith.cmpi eq, %arg1, %c0_i32 : i32
    %1 = arith.extui %0 : i1 to i32
    %c0_i32_0 = arith.constant 0 : i32
    %2 = arith.cmpi ne, %1, %c0_i32_0 : i32
    scf.if %2 {
      %cst_10 = arith.constant 0.000000e+00 : f32
      %15 = vector.broadcast %cst_10 : f32 to vector<8x128xf32>
      %c0_11 = arith.constant 0 : index
      %c0_12 = arith.constant 0 : index
      %16 = vector.load %arg5[%c0_11, %c0_12] : memref<8x128xf32, #tpu.memory_space<vmem>>, vector<8x128xf32>
      tpu.vector_store %arg5[%c0_11, %c0_12], %15 {strides = array<i32>} : memref<8x128xf32, #tpu.memory_space<vmem>>, vector<8x128xf32>,
    } else {
    }
    %c0 = arith.constant 0 : index
    %c0_1 = arith.constant 0 : index
    %3 = vector.load %arg2[%c0, %c0_1] : memref<16x128xf32, #tpu.memory_space<vmem>>, vector<16x128xf32>
    %c0_2 = arith.constant 0 : index
    %c0_3 = arith.constant 0 : index
    %4 = vector.load %arg3[%c0_2, %c0_3] : memref<16x128xf32, #tpu.memory_space<vmem>>, vector<16x128xf32>
    %5 = arith.subf %3, %4 : vector<16x128xf32>
    %6 = arith.mulf %5, %5 : vector<16x128xf32>
    %c0_4 = arith.constant 0 : index
    %c0_5 = arith.constant 0 : index
    %7 = vector.load %arg5[%c0_4, %c0_5] : memref<8x128xf32, #tpu.memory_space<vmem>>, vector<8x128xf32>
    %8 = vector.shape_cast %6 : vector<16x128xf32> to vector<2x8x128xf32>
    %cst = arith.constant dense<0.000000e+00> : vector<8x128xf32>
    %9 = vector.multi_reduction <add>, %8, %cst [0] : vector<2x8x128xf32> to vector<8x128xf32>
    %10 = arith.addf %7, %9 : vector<8x128xf32>
    %c0_6 = arith.constant 0 : index
    %c0_7 = arith.constant 0 : index
    %11 = vector.load %arg5[%c0_6, %c0_7] : memref<8x128xf32, #tpu.memory_space<vmem>>, vector<8x128xf32>
    tpu.vector_store %arg5[%c0_6, %c0_7], %10 {strides = array<i32>} : memref<8x128xf32, #tpu.memory_space<vmem>>, vector<8x128xf32>,
    %c0_i32_8 = arith.constant 0 : i32
    %12 = arith.cmpi eq, %arg1, %c0_i32_8 : i32
    %13 = arith.extui %12 : i1 to i32
    %c0_i32_9 = arith.constant 0 : i32
    %14 = arith.cmpi ne, %13, %c0_i32_9 : i32
    scf.if %14 {
      %c0_10 = arith.constant 0 : index
      %c0_11 = arith.constant 0 : index
      %15 = vector.load %arg5[%c0_10, %c0_11] : memref<8x128xf32, #tpu.memory_space<vmem>>, vector<8x128xf32>
      %cst_12 = arith.constant 4.8828125E-4 : f32
      %16 = vector.broadcast %cst_12 : f32 to vector<8x128xf32>
      %17 = arith.mulf %15, %16 : vector<8x128xf32>
      %c0_13 = arith.constant 0 : index
      %c0_14 = arith.constant 0 : index
      %c0_15 = arith.constant 0 : index
      %18 = vector.load %arg4[%c0_13, %c0_14, %c0_15] : memref<1x8x128xf32, #tpu.memory_space<vmem>>, vector<1x8x128xf32>
      %19 = vector.shape_cast %18 : vector<1x8x128xf32> to vector<8x128xf32>
      %20 = vector.shape_cast %17 : vector<8x128xf32> to vector<1x8x128xf32>
      tpu.vector_store %arg4[%c0_13, %c0_14, %c0_15], %20 {strides = array<i32>} : memref<1x8x128xf32, #tpu.memory_space<vmem>>, vector<1x8x128xf32>,
    } else {
    }
    return
  }
  func.func @transform_0(%arg0: i32, %arg1: i32) -> (i32, i32) {
    %c1_i32 = arith.constant 1 : i32
    %0 = arith.muli %arg0, %c1_i32 : i32
    %1 = arith.addi %0, %arg1 : i32
    %c0_i32 = arith.constant 0 : i32
    %2 = arith.minsi %1, %c0_i32 : i32
    %c0_i32_0 = arith.constant 0 : i32
    %c0_i32_1 = arith.constant 0 : i32
    return %2, %c0_i32_0 : i32, i32
  }
  func.func @transform_1(%arg0: i32, %arg1: i32) -> (i32, i32) {
    %c1_i32 = arith.constant 1 : i32
    %0 = arith.muli %arg0, %c1_i32 : i32
    %1 = arith.addi %0, %arg1 : i32
    %c0_i32 = arith.constant 0 : i32
    %2 = arith.minsi %1, %c0_i32 : i32
    %c0_i32_0 = arith.constant 0 : i32
    %c0_i32_1 = arith.constant 0 : i32
    return %2, %c0_i32_0 : i32, i32
  }
  func.func @transform_2(%arg0: i32, %arg1: i32) -> (i32, i32, i32) {
    %c0_i32 = arith.constant 0 : i32
    %c0_i32_0 = arith.constant 0 : i32
    %c0_i32_1 = arith.constant 0 : i32
    return %arg0, %c0_i32, %c0_i32_0 : i32, i32, i32
  }
}

</mosaic_0001>

<bundles_post_ra>
// kernel: tpu_custom_call.1
= control target key start
LH: loop header
LB: loop body
LE: loop exit
PB: predicated region body
PF: predicated region fallthrough
CT: control target
= control target key end

     0   :  { %7 = vsyncpa [#allocation4], 0  ;;  %s236_s0 = inlined_call_operand.hbm [shape: f32[16,128], index: 0, kind: input, shape index: {}]   ;;  %s237_s1 = inlined_call_operand.hbm [shape: f32[16,128], index: 1, kind: input, shape index: {}]   ;;  %s238_s2 = inlined_call_operand.hbm [shape: f32[1,8,128], index: 2, kind: output, shape index: {}]  }
   0x1   :  { %8 = vsyncpa [#allocation7], 0 }
   0x2   :  { %9 = vsyncpa [#allocation5], 0  ;;  %s180_s9 = smov [#allocation3]   ;;  %s108_s13 = scalar_lea.hbm %s236_s0, 256 }
   0x3   :  { %s21_s10 = sshll.u32 %s180_s9, 4  ;;  %p109_p0 = scmp.ne.s32.totalorder %s236_s0, %s108_s13  ;;  %s22_s10 = int_to_ptr.vmem [resolvable:$true] %s21_s10 }
   0x4   :  { %p112_p1 = scmp.lt.u32.totalorder %s108_s13, %s236_s0 }
   0x6   :  { %p114_p2 = pnand %p112_p1, %p109_p0 }
   0x8   :  { %117 = shalt.err (!%p114_p2)
}
   0x9   :  { %s118_s18 = scalar_lea.vmem %s22_s10, 256  ;;  %p123_p4 = scmp.lt.s32.totalorder %s22_s10, %s22_s10 }
   0xa   :  { %p119_p3 = scmp.ne.s32.totalorder %s22_s10, %s118_s18  ;;  %p124_p5 = scmp.lt.s32.totalorder %s118_s18, %s118_s18 }
   0xc   :  { %p125_p6 = por %p124_p5, %p123_p4 }
   0xe   :  { %p126_p7 = pnand %p125_p6, %p119_p3 }
  0x10   :  { %129 = shalt.err (!%p126_p7)
}
  0x11   :  { %s181_s19 = smov 128   ;;  %s182_s20 = smov 8  }
  0x12   :  { %27 = dma.hbm_to_vmem [thread:$0]  %s236_s0, 256, %s22_s10, [#allocation4], %s181_s19, %s181_s19, %s182_s20  }
  0x13   :  { %s183_s23 = smov [#allocation6]   ;;  %s130_s27 = scalar_lea.hbm %s237_s1, 256 }
  0x14   :  { %s39_s24 = sshll.u32 %s183_s23, 4  ;;  %p131_p8 = scmp.ne.s32.totalorder %s237_s1, %s130_s27  ;;  %s40_s24 = int_to_ptr.vmem [resolvable:$true] %s39_s24 }
  0x15   :  { %p134_p9 = scmp.lt.u32.totalorder %s130_s27, %s237_s1 }
  0x17   :  { %p136_p10 = pnand %p134_p9, %p131_p8 }
  0x19   :  { %139 = shalt.err (!%p136_p10)
}
  0x1a   :  { %s140_s4 = scalar_lea.vmem %s40_s24, 256  ;;  %p145_p12 = scmp.lt.s32.totalorder %s40_s24, %s40_s24 }
  0x1b   :  { %p141_p11 = scmp.ne.s32.totalorder %s40_s24, %s140_s4  ;;  %p146_p13 = scmp.lt.s32.totalorder %s140_s4, %s140_s4 }
  0x1d   :  { %p147_p0 = por %p146_p13, %p145_p12 }
  0x1f   :  { %p148_p1 = pnand %p147_p0, %p141_p11 }
  0x21   :  { %151 = shalt.err (!%p148_p1)
}
  0x22   :  { %45 = dma.hbm_to_vmem [thread:$0]  %s237_s1, 256, %s40_s24, [#allocation7], %s181_s19, %s181_s19, %s182_s20  }
  0x23   :  { %174 = dma.done.wait [#allocation4], 256  }
  0x24   :  { %175 = vsyncadd [#allocation4], 4294967040 }
  0x25   :  { %176 = dma.done.wait [#allocation7], 256  }
  0x26   :  { %177 = vsyncadd [#allocation7], 4294967040  ;;  %v65_v0 = vld [vmem:[#allocation3] sm:$0xff]  ;;  %v66_v1 = vld [vmem:[#allocation3 + $0x8] sm:$0xff]  ;;  %s184_s6 = smov [#allocation8]  }
  0x27   :  { %v67_v2 = vld [vmem:[#allocation6] sm:$0xff]  ;;  %v68_v3 = vld [vmem:[#allocation6 + $0x8] sm:$0xff]  ;;  %s89_s7 = sshll.u32 %s184_s6, 4  ;;  %s90_s7 = int_to_ptr.vmem [resolvable:$true] %s89_s7 }
  0x28   :  { %v69_v4 = vsub.f32 %v65_v0, %v67_v2  ;;  %v70_v5 = vsub.f32 %v66_v1, %v68_v3  ;;  %s152_s8 = scalar_lea.vmem %s90_s7, 128  ;;  %p157_p3 = scmp.lt.s32.totalorder %s90_s7, %s90_s7 }
  0x29   :  { %p153_p2 = scmp.ne.s32.totalorder %s90_s7, %s152_s8  ;;  %p158_p4 = scmp.lt.s32.totalorder %s152_s8, %s152_s8 }
  0x2a   :  { %v71_v6 = vmul.f32 %v69_v4, %v69_v4  ;;  %v72_v7 = vmul.f32 %v70_v5, %v70_v5 }
  0x2b   :  { %p159_p5 = por %p158_p4, %p157_p3 }
  0x2c   :  { %v74_v8 = vadd.f32 %v72_v7, %v71_v6 }
  0x2d   :  { %p160_p6 = pnand %p159_p5, %p153_p2 }
  0x2e   :  { %v81_v9 = vmul.f32 0.00048828125, %v74_v8 }
  0x30   :  { %82 = vst [vmem:[#allocation8] sm:$0xff] %v81_v9 }
  0x31   :  { %163 = shalt.err (!%p160_p6)
}
  0x32   :  { %s164_s10 = scalar_lea.hbm %s238_s2, 128 }
  0x33   :  { %p165_p7 = scmp.ne.s32.totalorder %s238_s2, %s164_s10  ;;  %p168_p8 = scmp.lt.u32.totalorder %s164_s10, %s238_s2 }
  0x35   :  { %p170_p9 = pnand %p168_p8, %p165_p7 }
  0x37   :  { %173 = shalt.err (!%p170_p9)
}
  0x38   :  { %92 = dma.vmem_to_hbm [thread:$0]  %s90_s7, 128, %s238_s2, [#allocation5]  }
  0x39   :  { %178 = dma.done.wait [#allocation5], 128  }
  0x3a   :  { %179 = vsyncadd [#allocation5], 4294967168 }
  0x3b   :  { %96 = vsyncpa [#allocation4], 1 }
  0x3c   :  { %97 = vsyncpa [#allocation7], 1 }
  0x3d   :  { %98 = vsyncpa [#allocation5], 1 }

</bundles_post_ra>
